<compile_context>
chip_gen: v5e
topology: v5e:2x2
jax: 0.10.0
libtpu: 0.0.40
codegen_flags: <defaults>
</compile_context>

<pallas_src>
import math

import jax
import jax.numpy as jnp
from jax.experimental import pallas as pl
from jax.experimental.pallas import tpu as pltpu

LANE = 128
SUBLANE = 8


def _round_up(x: int, m: int) -> int:
    return -(-x // m) * m


def _cdiv(a: int, b: int) -> int:
    return -(-a // b)


def _chip_defaults():
    """Return (target_tile_bytes, n_splits) for the current TPU generation."""
    kind = ""
    try:
        dev = jax.devices()[0]
        if dev.platform == "tpu":
            kind = dev.device_kind.lower()
    except Exception:
        pass
    is_v7 = ("v7" in kind) or ("tpu7" in kind)
    is_v6 = "v6" in kind
    if is_v7 or is_v6:
        tile_bytes = 8 * 1024 * 1024   # 1.43-3.2 TB/s: step overhead <10%
    else:
        tile_bytes = 4 * 1024 * 1024   # v5e & older: 2x4 MiB fits 16 MiB scoped VMEM
    n_splits = 2 if is_v7 else 1       # only v7x has 2 TensorCores per chip
    return tile_bytes, n_splits


def backscatter_loss(direct: jax.Array, cost_ratio: float = 1000.0) -> jax.Array:
    """Pallas implementation of BackscatterLoss.forward. Returns a () float32."""
    n = int(math.prod(direct.shape))
    cr = float(cost_ratio)
    inv_n = 1.0 / float(n)

    flat = direct.reshape(-1)
    rows_full = n // LANE
    n_bulk = rows_full * LANE
    tail = n - n_bulk

    if rows_full == 0:
        # Tiny input (< 128 elements): pure jnp, nothing worth a kernel.
        x = flat.astype(jnp.float32)
        s_pos = jnp.sum(jnp.where(x > 0, x, 0.0))
        s_neg = jnp.sum(jnp.where(x < 0, -x, 0.0))
        return (cr * s_neg + s_pos) * inv_n

    # ---- generation-aware tiling ---------------------------------------------
    tile_bytes, want_splits = _chip_defaults()
    itemsize = jnp.dtype(direct.dtype).itemsize
    packing = max(1, 4 // itemsize)          # 1 for f32, 2 for bf16, 4 for int8/fp8
    sub = SUBLANE * packing                  # native sublane granule: 8 / 16 / 32 rows
    big = 8 * sub                            # slab granule for large tiles
    max_rows = max(big, (tile_bytes // (LANE * itemsize)) // big * big)

    # Bulk view (zero-copy reshape when n is a lane multiple).
    bulk = flat if tail == 0 else jax.lax.slice(flat, (0,), (n_bulk,))
    x2d = bulk.reshape(rows_full, LANE)

    if rows_full <= max_rows:
        # Single block over the whole (small) bulk.  Pad to a sublane multiple
        # with zeros (zeros contribute nothing to pos/neg sums), so no
        # in-kernel masking is needed.  Padding cost is bounded by one tile.
        block_rows = _round_up(rows_full, sub)
        if block_rows != rows_full:
            x2d = jnp.pad(x2d, ((0, block_rows - rows_full), (0, 0)))
        num_blocks = 1
        partial_last = False
    else:
        block_rows = max_rows                # multiple of 8*sub
        num_blocks = _cdiv(rows_full, block_rows)
        partial_last = (rows_full % block_rows) != 0

    n_splits = min(want_splits, num_blocks)
    blocks_per_split = _cdiv(num_blocks, n_splits)
    over_provisioned = n_splits * blocks_per_split > num_blocks
    needs_mask = partial_last or over_provisioned

    # Static slab decomposition of one block: slab_rows divides block_rows,
    # is a multiple of `sub`, and holds at most 8 sublane groups per packing.
    m = block_rows // sub
    slab_groups = max(k for k in range(1, 9) if m % k == 0)
    slab_rows = slab_groups * sub
    nslabs = block_rows // slab_rows

    # ---- kernel ----------------------------------------------------------------
    def kernel(x_ref, out_ref):
        j = pl.program_id(1)

        @pl.when(j == 0)
        def _init():
            out_ref[...] = jnp.zeros_like(out_ref)

        if needs_mask:
            c = pl.program_id(0)
            g = c * blocks_per_split + j                 # un-clamped logical block id
            rows_valid = rows_full - g * block_rows      # real rows in this block (<=0 => none)
            base_rows = jax.lax.broadcasted_iota(jnp.int32, (slab_rows, 1), 0)

        def slab_step(i, carry):
            acc_pos, acc_neg = carry
            r0 = pl.multiple_of(i * slab_rows, slab_rows)
            s = x_ref[pl.ds(r0, slab_rows), :].astype(jnp.float32)
            pos_m = s > 0.0
            neg_m = s < 0.0
            if needs_mask:
                valid = base_rows < (rows_valid - r0)    # (slab_rows, 1), tiny temp
                pos_m = jnp.logical_and(pos_m, valid)
                neg_m = jnp.logical_and(neg_m, valid)
            pos_s = jnp.where(pos_m, s, 0.0).reshape(slab_rows // SUBLANE, SUBLANE, LANE)
            neg_s = jnp.where(neg_m, -s, 0.0).reshape(slab_rows // SUBLANE, SUBLANE, LANE)
            return (acc_pos + jnp.sum(pos_s, axis=0),
                    acc_neg + jnp.sum(neg_s, axis=0))

        zero = jnp.zeros((SUBLANE, LANE), jnp.float32)
        acc_pos, acc_neg = jax.lax.fori_loop(
            0, nslabs, slab_step, (zero, zero), unroll=min(4, nslabs))

        out_ref[0, 0, :, :] += acc_pos
        out_ref[0, 1, :, :] += acc_neg

    def in_index(c, j):
        g = c * blocks_per_split + j
        if over_provisioned:
            # Wasted grid slot on an odd block count: clamp (fully masked above).
            g = jnp.minimum(g, num_blocks - 1)
        return (g, 0)

    parts = pl.pallas_call(
        kernel,
        out_shape=jax.ShapeDtypeStruct((n_splits, 2, SUBLANE, LANE), jnp.float32),
        grid_spec=pltpu.PrefetchScalarGridSpec(
            num_scalar_prefetch=0,
            grid=(n_splits, blocks_per_split),
            in_specs=[pl.BlockSpec((block_rows, LANE), in_index)],
            out_specs=pl.BlockSpec((1, 2, SUBLANE, LANE), lambda c, j: (c, 0, 0, 0)),
        ),
        compiler_params=pltpu.CompilerParams(
            dimension_semantics=("parallel", "arbitrary"),
            vmem_limit_bytes=32 * 1024 * 1024,
            # Let XLA fuse the bulk slice into the operand (instead of a full
            # HBM copy) when a < 128-element tail forces a prefix slice.
            allow_input_fusion=[True] if tail else None,
        ),
        cost_estimate=pl.CostEstimate(
            flops=6 * n_bulk,
            transcendentals=0,
            bytes_accessed=n_bulk * itemsize + n_splits * 2 * SUBLANE * LANE * 4,
        ),
    )(x2d)

    # ---- tiny epilogue: cross-lane reduce + tail + scalar math -----------------
    s_pos = jnp.sum(parts[:, 0])
    s_neg = jnp.sum(parts[:, 1])
    if tail:
        t = jax.lax.slice(flat, (n_bulk,), (n,)).astype(jnp.float32)
        s_pos = s_pos + jnp.sum(jnp.where(t > 0, t, 0.0))
        s_neg = s_neg + jnp.sum(jnp.where(t < 0, -t, 0.0))
    return (cr * s_neg + s_pos) * inv_n


def backscatter_loss_ref(direct: jax.Array, cost_ratio: float = 1000.0) -> jax.Array:
    x = direct.astype(jnp.float32)
    pos = jnp.mean(jnp.where(x > 0, x, 0.0))
    neg = jnp.mean(jnp.where(x < 0, -x, 0.0))
    return cost_ratio * neg + pos


if __name__ == "__main__":
    key = jax.random.PRNGKey(0)
    # NCHW input, as the PyTorch module would receive.
    x = jax.random.normal(key, (2, 4, 16, 16), dtype=jnp.float32)

    fn = jax.jit(lambda a: backscatter_loss(a, cost_ratio=1000.0))
    loss = jax.block_until_ready(fn(x))
    ref = jax.block_until_ready(backscatter_loss_ref(x, cost_ratio=1000.0))

    assert jnp.allclose(loss, ref, rtol=1e-5, atol=1e-5), (loss, ref)
    print("KERNEL_OK")
</pallas_src>

<mosaic_0001>
module attributes {stable_mosaic.version = 11 : i64} {
  func.func @kernel(%arg0: i32, %arg1: i32, %arg2: memref<16x128xf32, #tpu.memory_space<vmem>>, %arg3: memref<1x2x8x128xf32, #tpu.memory_space<vmem>>) attributes {dimension_semantics = [#tpu.dimension_semantics<parallel>, #tpu.dimension_semantics<arbitrary>], iteration_bounds = array<i64: 1, 1>, scalar_prefetch = 0 : i64, scratch_operands = 0 : i64, tpu.core_type = #tpu.core_type<tc>, window_params = [{transform_indices = @transform_0, window_bounds = array<i64: 16, 128>}, {transform_indices = @transform_1, window_bounds = array<i64: 1, 2, 8, 128>}]} {
    %c0_i32 = arith.constant 0 : i32
    %0 = arith.cmpi eq, %arg1, %c0_i32 : i32
    %1 = arith.extui %0 : i1 to i32
    %c0_i32_0 = arith.constant 0 : i32
    %2 = arith.cmpi ne, %1, %c0_i32_0 : i32
    scf.if %2 {
      %cst_24 = arith.constant 0.000000e+00 : f32
      %36 = vector.broadcast %cst_24 : f32 to vector<1x2x8x128xf32>
      %c0_25 = arith.constant 0 : index
      %c0_26 = arith.constant 0 : index
      %c0_27 = arith.constant 0 : index
      %c0_28 = arith.constant 0 : index
      %37 = vector.load %arg3[%c0_25, %c0_26, %c0_27, %c0_28] : memref<1x2x8x128xf32, #tpu.memory_space<vmem>>, vector<1x2x8x128xf32>
      tpu.vector_store %arg3[%c0_25, %c0_26, %c0_27, %c0_28], %36 {strides = array<i32>} : memref<1x2x8x128xf32, #tpu.memory_space<vmem>>, vector<1x2x8x128xf32>,
    } else {
    }
    %cst = arith.constant 0.000000e+00 : f32
    %3 = vector.broadcast %cst : f32 to vector<8x128xf32>
    %c0_i32_1 = arith.constant 0 : i32
    %c16_i32 = arith.constant 16 : i32
    %4 = arith.muli %c0_i32_1, %c16_i32 : i32
    %5 = tpu.assume_multiple %4, 16 : i32
    %6 = arith.index_cast %5 : i32 to index
    %c0 = arith.constant 0 : index
    %7 = vector.load %arg2[%6, %c0] : memref<16x128xf32, #tpu.memory_space<vmem>>, vector<16x128xf32>
    %cst_2 = arith.constant 0.000000e+00 : f32
    %8 = vector.broadcast %cst_2 : f32 to vector<16x128xf32>
    %9 = arith.cmpf ogt, %7, %8 : vector<16x128xf32>
    %cst_3 = arith.constant 0.000000e+00 : f32
    %10 = vector.broadcast %cst_3 : f32 to vector<16x128xf32>
    %11 = arith.cmpf olt, %7, %10 : vector<16x128xf32>
    %cst_4 = arith.constant 0.000000e+00 : f32
    %12 = vector.broadcast %cst_4 : f32 to vector<16x128xf32>
    %13 = arith.select %9, %7, %12 : vector<16x128xi1>, vector<16x128xf32>
    %14 = vector.shape_cast %13 : vector<16x128xf32> to vector<2x8x128xf32>
    %cst_5 = arith.constant 0.000000e+00 : f32
    %15 = vector.broadcast %cst_5 : f32 to vector<16x128xf32>
    %16 = arith.subf %15, %7 : vector<16x128xf32>
    %cst_6 = arith.constant 0.000000e+00 : f32
    %17 = vector.broadcast %cst_6 : f32 to vector<16x128xf32>
    %18 = arith.select %11, %16, %17 : vector<16x128xi1>, vector<16x128xf32>
    %19 = vector.shape_cast %18 : vector<16x128xf32> to vector<2x8x128xf32>
    %cst_7 = arith.constant dense<0.000000e+00> : vector<8x128xf32>
    %20 = vector.multi_reduction <add>, %14, %cst_7 [0] : vector<2x8x128xf32> to vector<8x128xf32>
    %21 = arith.addf %3, %20 : vector<8x128xf32>
    %cst_8 = arith.constant dense<0.000000e+00> : vector<8x128xf32>
    %22 = vector.multi_reduction <add>, %19, %cst_8 [0] : vector<2x8x128xf32> to vector<8x128xf32>
    %23 = arith.addf %3, %22 : vector<8x128xf32>
    %c1_i32 = arith.constant 1 : i32
    %c0_9 = arith.constant 0 : index
    %c0_10 = arith.constant 0 : index
    %c0_11 = arith.constant 0 : index
    %c0_12 = arith.constant 0 : index
    %24 = vector.load %arg3[%c0_9, %c0_10, %c0_11, %c0_12] : memref<1x2x8x128xf32, #tpu.memory_space<vmem>>, vector<1x1x8x128xf32>
    %25 = vector.shape_cast %24 : vector<1x1x8x128xf32> to vector<8x128xf32>
    %26 = arith.addf %25, %21 : vector<8x128xf32>
    %c0_13 = arith.constant 0 : index
    %c0_14 = arith.constant 0 : index
    %c0_15 = arith.constant 0 : index
    %c0_16 = arith.constant 0 : index
    %27 = vector.load %arg3[%c0_13, %c0_14, %c0_15, %c0_16] : memref<1x2x8x128xf32, #tpu.memory_space<vmem>>, vector<1x1x8x128xf32>
    %28 = vector.shape_cast %27 : vector<1x1x8x128xf32> to vector<8x128xf32>
    %29 = vector.shape_cast %26 : vector<8x128xf32> to vector<1x1x8x128xf32>
    tpu.vector_store %arg3[%c0_13, %c0_14, %c0_15, %c0_16], %29 {strides = array<i32>} : memref<1x2x8x128xf32, #tpu.memory_space<vmem>>, vector<1x1x8x128xf32>,
    %c0_17 = arith.constant 0 : index
    %c1 = arith.constant 1 : index
    %c0_18 = arith.constant 0 : index
    %c0_19 = arith.constant 0 : index
    %30 = vector.load %arg3[%c0_17, %c1, %c0_18, %c0_19] : memref<1x2x8x128xf32, #tpu.memory_space<vmem>>, vector<1x1x8x128xf32>
    %31 = vector.shape_cast %30 : vector<1x1x8x128xf32> to vector<8x128xf32>
    %32 = arith.addf %31, %23 : vector<8x128xf32>
    %c0_20 = arith.constant 0 : index
    %c1_21 = arith.constant 1 : index
    %c0_22 = arith.constant 0 : index
    %c0_23 = arith.constant 0 : index
    %33 = vector.load %arg3[%c0_20, %c1_21, %c0_22, %c0_23] : memref<1x2x8x128xf32, #tpu.memory_space<vmem>>, vector<1x1x8x128xf32>
    %34 = vector.shape_cast %33 : vector<1x1x8x128xf32> to vector<8x128xf32>
    %35 = vector.shape_cast %32 : vector<8x128xf32> to vector<1x1x8x128xf32>
    tpu.vector_store %arg3[%c0_20, %c1_21, %c0_22, %c0_23], %35 {strides = array<i32>} : memref<1x2x8x128xf32, #tpu.memory_space<vmem>>, vector<1x1x8x128xf32>,
    return
  }
  func.func @transform_0(%arg0: i32, %arg1: i32) -> (i32, i32) {
    %c1_i32 = arith.constant 1 : i32
    %0 = arith.muli %arg0, %c1_i32 : i32
    %1 = arith.addi %0, %arg1 : i32
    %c0_i32 = arith.constant 0 : i32
    %c0_i32_0 = arith.constant 0 : i32
    return %1, %c0_i32 : i32, i32
  }
  func.func @transform_1(%arg0: i32, %arg1: i32) -> (i32, i32, i32, i32) {
    %c0_i32 = arith.constant 0 : i32
    %c0_i32_0 = arith.constant 0 : i32
    %c0_i32_1 = arith.constant 0 : i32
    %c0_i32_2 = arith.constant 0 : i32
    return %arg0, %c0_i32, %c0_i32_0, %c0_i32_1 : i32, i32, i32, i32
  }
}

</mosaic_0001>

<bundles_post_ra>
// kernel: _lambda_.1
= control target key start
LH: loop header
LB: loop body
LE: loop exit
PB: predicated region body
PF: predicated region fallthrough
CT: control target
= control target key end

     0   :  { %s94_s0 = inlined_call_operand.vmem [shape: f32[16,128], index: 0, kind: input, shape index: {}]   ;;  %s95_s1 = inlined_call_operand.vmem [shape: f32[1,2,8,128], index: 1, kind: output, shape index: {}]  }
   0x1   :  { %v36_v0 = vld [vmem:[%s94_s0] sm:$0xff]  ;;  %v37_v1 = vld [vmem:[%s94_s0 + $0x8] sm:$0xff] }
   0x2   :  { %vm38_vm0 = vcmp.gt.f32.partialorder %v36_v0, 0.0  ;;  %vm39_vm1 = vcmp.gt.f32.partialorder %v37_v1, 0.0  ;;  %vm40_vm2 = vcmp.lt.f32.partialorder %v36_v0, 0.0  ;;  %vm41_vm3 = vcmp.lt.f32.partialorder %v37_v1, 0.0 }
   0x3   :  { %v42_v2 = vsel %vm38_vm0, %v36_v0, 0.0  ;;  %v43_v3 = vsel %vm39_vm1, %v37_v1, 0.0  ;;  %v44_v4 = vsub.f32 0.0, %v36_v0  ;;  %v45_v5 = vsub.f32 0.0, %v37_v1 }
   0x4   :  { %v48_v6 = vadd.f32 %v43_v3, %v42_v2 }
   0x5   :  { %v46_v7 = vsel %vm40_vm2, %v44_v4, 0.0  ;;  %v47_v8 = vsel %vm41_vm3, %v45_v5, 0.0 }
   0x6   :  { %v50_v9 = vadd.f32 %v47_v8, %v46_v7  ;;  %54 = vst [vmem:[%s95_s1] sm:$0xff] %v48_v6 }
   0x8   :  { %70 = vst [vmem:[%s95_s1 + $0x8] sm:$0xff] %v50_v9 }

</bundles_post_ra>
